<compile_context>
chip_gen: v7x
topology: tpu7x:2x2x1
jax: 0.10.0
libtpu: 0.0.40
codegen_flags: <defaults>
</compile_context>

<pallas_src>
import functools

import jax
import jax.numpy as jnp
from jax import lax
from jax.experimental import pallas as pl
from jax.experimental.pallas import tpu as pltpu


def _round_up(x, m):
    return (x + m - 1) // m * m


def downblock_kernel(x_ref, te_ref, w1_ref, b1_ref, w2_ref, b2_ref, h_ref,
                     *, H, W, Cin, Cout):
    """One batch element per grid step; working layout is (channels, H*W).

    x_ref  : (1, Cin, H*W)  f32   flattened-NCHW image (lane axis = H*W)
    te_ref : (1, Cout, 1)   f32   relu(time_emb @ Wt + bt), precomputed
    w1_ref : (Cout, 9*Cin)  bf16  conv1 weight, column k = tap*(Cin)+ci,
                                  tap = 3*kh + kw
    b1_ref : (Cout, 1)      f32
    w2_ref : (Cout, 9*Cout) bf16  conv2 weight (same packing)
    b2_ref : (Cout, 1)      f32
    h_ref  : (1, Cout, H*W) f32   pre-pool output (flattened NCHW)
    """
    HW = H * W
    PAD = _round_up(W + 1, 128)     # lane-aligned zero extension on each side
    f32 = jnp.float32

    # 0/1 column-border masks, generated in-kernel (no DMA stream, no VMEM
    # residency).  s = i*W + j  ->  j = s % W.
    s = lax.broadcasted_iota(jnp.int32, (1, HW), 1)
    col = s % W
    ok_left = col != 0              # reading column j-1 is valid
    ok_right = col != (W - 1)       # reading column j+1 is valid

    def conv3x3(img, w_mat):
        """img: (C, HW) f32 -> (Cout, HW) f32; 3x3 'same' conv, zero padding.

        Builds the 9-tap im2col stack (9C, HW) with static lane slices of the
        zero-extended image and contracts it in a single MXU dot.  Row (+-W)
        over/underflow lands in the zero pad; only the two column masks are
        needed, and they stay correctly positioned after the +-W shifts
        because shifting by a multiple of W does not change the column index.
        """
        C = img.shape[0]
        zc = jnp.zeros((C, PAD), f32)
        imgp = jnp.concatenate([zc, img, zc], axis=1)          # aligned concat
        left = jnp.where(ok_left, imgp[:, PAD - 1:PAD - 1 + HW], 0.0)   # x[s-1]
        right = jnp.where(ok_right, imgp[:, PAD + 1:PAD + 1 + HW], 0.0)  # x[s+1]
        base = jnp.concatenate([left, img, right], axis=0)     # (3C, HW) kw=0,1,2
        zb = jnp.zeros((3 * C, PAD), f32)
        basep = jnp.concatenate([zb, base, zb], axis=1)
        up = basep[:, PAD - W:PAD - W + HW]                    # row i-1 (kh=0)
        down = basep[:, PAD + W:PAD + W + HW]                  # row i+1 (kh=2)
        patches = jnp.concatenate([up, base, down], axis=0)    # (9C, HW)
        # One MXU dot per conv: bf16 operands, f32 accumulation.
        return jnp.dot(w_mat, patches.astype(jnp.bfloat16),
                       preferred_element_type=f32)

    x = x_ref[0]                                               # (Cin, HW) f32

    # conv1 -> relu -> + time embedding (broadcast over lanes)
    h1 = jnp.maximum(conv3x3(x, w1_ref[...]) + b1_ref[...], 0.0) + te_ref[0]

    # conv2 -> relu
    h2 = jnp.maximum(conv3x3(h1, w2_ref[...]) + b2_ref[...], 0.0)
    h_ref[0] = h2                                              # lane-dense store


def _conv_weight_to_mat(w_hwio):
    """(3, 3, Cin, Cout) HWIO conv weight -> (Cout, 9*Cin) bf16 for the MXU."""
    kh, kw, cin, cout = w_hwio.shape
    assert kh == 3 and kw == 3
    m = jnp.transpose(w_hwio.astype(jnp.float32).reshape(9, cin, cout),
                      (2, 0, 1)).reshape(cout, 9 * cin)
    return m.astype(jnp.bfloat16)


def downblock_pallas(x_nchw, t_emb, params):
    """NCHW in, (h, p) NCHW out — matches the PyTorch DownBlock forward."""
    N, Cin, H, W = x_nchw.shape
    Cout = params["w1"].shape[-1]
    assert H % 2 == 0 and W % 2 == 0, "MaxPool2d(2) expects even spatial dims"
    HW = H * W

    # Flattened NCHW: a free reshape — no transposes needed in this layout.
    x = x_nchw.astype(jnp.float32).reshape(N, Cin, HW)

    # Time-embedding projection hoisted out of the kernel (tiny exact f32 gemm).
    te = jnp.maximum(
        jnp.dot(t_emb.astype(jnp.float32), params["wt"].astype(jnp.float32),
                precision=lax.Precision.HIGHEST)
        + params["bt"].astype(jnp.float32), 0.0)
    te = te.reshape(N, Cout, 1)

    w1m = _conv_weight_to_mat(params["w1"])                    # (Cout, 9*Cin)
    w2m = _conv_weight_to_mat(params["w2"])                    # (Cout, 9*Cout)
    b1 = params["b1"].astype(jnp.float32).reshape(Cout, 1)
    b2 = params["b2"].astype(jnp.float32).reshape(Cout, 1)

    kernel = functools.partial(downblock_kernel, H=H, W=W, Cin=Cin, Cout=Cout)

    h_flat = pl.pallas_call(
        kernel,
        out_shape=jax.ShapeDtypeStruct((N, Cout, HW), jnp.float32),
        grid_spec=pltpu.PrefetchScalarGridSpec(
            num_scalar_prefetch=0,
            grid=(N,),                 # one image per step; N even keeps both
                                       # v7x TensorCores busy
            in_specs=[
                pl.BlockSpec((1, Cin, HW), lambda n: (n, 0, 0)),
                pl.BlockSpec((1, Cout, 1), lambda n: (n, 0, 0)),
                pl.BlockSpec((Cout, 9 * Cin), lambda n: (0, 0)),
                pl.BlockSpec((Cout, 1), lambda n: (0, 0)),
                pl.BlockSpec((Cout, 9 * Cout), lambda n: (0, 0)),
                pl.BlockSpec((Cout, 1), lambda n: (0, 0)),
            ],
            out_specs=pl.BlockSpec((1, Cout, HW), lambda n: (n, 0, 0)),
        ),
        compiler_params=pltpu.CompilerParams(
            dimension_semantics=("parallel",),
            vmem_limit_bytes=32 * 1024 * 1024,   # explicit VMEM budget (v7x)
        ),
    )(x, te, w1m, b1, w2m, b2)

    # Free reshape back to NCHW.
    h = h_flat.reshape(N, Cout, H, W)
    # 2x2 / stride-2 max pool as an XLA window max on the already-materialized
    # h (perf-review option (a)): h goes to HBM anyway as a module output, and
    # this removes the quadratic in-kernel selection matmul entirely.
    p = h.reshape(N, Cout, H // 2, 2, W // 2, 2).max(axis=(3, 5))
    return h, p


def downblock_reference(x_nchw, t_emb, params):
    """Pure-JAX f32/HIGHEST reference with the PyTorch module's semantics."""
    x = jnp.transpose(x_nchw, (0, 2, 3, 1)).astype(jnp.float32)
    dn = ("NHWC", "HWIO", "NHWC")
    h = lax.conv_general_dilated(x, params["w1"], (1, 1), "SAME",
                                 dimension_numbers=dn,
                                 precision=lax.Precision.HIGHEST)
    h = jnp.maximum(h + params["b1"], 0.0)
    te = jnp.maximum(
        jnp.dot(t_emb, params["wt"], precision=lax.Precision.HIGHEST)
        + params["bt"], 0.0)
    h = h + te[:, None, None, :]
    h = lax.conv_general_dilated(h, params["w2"], (1, 1), "SAME",
                                 dimension_numbers=dn,
                                 precision=lax.Precision.HIGHEST)
    h = jnp.maximum(h + params["b2"], 0.0)
    n, hh, ww, c = h.shape
    p = h.reshape(n, hh // 2, 2, ww // 2, 2, c).max(axis=(2, 4))
    return jnp.transpose(h, (0, 3, 1, 2)), jnp.transpose(p, (0, 3, 1, 2))


if __name__ == "__main__":
    N, Cin, Cout, H, W, T = 2, 4, 8, 16, 16, 32

    key = jax.random.PRNGKey(0)
    ks = jax.random.split(key, 8)
    params = {
        "w1": 0.2 * jax.random.normal(ks[0], (3, 3, Cin, Cout), jnp.float32),
        "b1": 0.1 * jax.random.normal(ks[1], (Cout,), jnp.float32),
        "wt": 0.2 * jax.random.normal(ks[2], (T, Cout), jnp.float32),
        "bt": 0.1 * jax.random.normal(ks[3], (Cout,), jnp.float32),
        "w2": 0.2 * jax.random.normal(ks[4], (3, 3, Cout, Cout), jnp.float32),
        "b2": 0.1 * jax.random.normal(ks[5], (Cout,), jnp.float32),
    }
    x = jax.random.normal(ks[6], (N, Cin, H, W), jnp.float32)
    t_emb = jax.random.normal(ks[7], (N, T), jnp.float32)

    h_out, p_out = jax.jit(downblock_pallas)(x, t_emb, params)
    jax.block_until_ready((h_out, p_out))

    h_gold, p_gold = downblock_reference(x, t_emb, params)

    assert h_out.shape == (N, Cout, H, W)
    assert p_out.shape == (N, Cout, H // 2, W // 2)
    # The kernel uses bf16 MXU operands with f32 accumulation; versus the
    # f32/HIGHEST reference the error is bounded by operand rounding, so the
    # tolerance is loosened (per the review's correctness note).
    assert jnp.allclose(h_out, h_gold, rtol=5e-2, atol=1e-1), "h mismatch"
    assert jnp.allclose(p_out, p_gold, rtol=5e-2, atol=1e-1), "p mismatch"

    print("KERNEL_OK")
</pallas_src>

<mosaic_0001>
module attributes {stable_mosaic.version = 11 : i64} {
  func.func @downblock_kernel(%arg0: i32, %arg1: memref<1x4x256xf32, #tpu.memory_space<vmem>>, %arg2: memref<1x8x1xf32, #tpu.memory_space<vmem>>, %arg3: memref<8x36xbf16, #tpu.memory_space<vmem>>, %arg4: memref<8x1xf32, #tpu.memory_space<vmem>>, %arg5: memref<8x72xbf16, #tpu.memory_space<vmem>>, %arg6: memref<8x1xf32, #tpu.memory_space<vmem>>, %arg7: memref<1x8x256xf32, #tpu.memory_space<vmem>>) attributes {dimension_semantics = [#tpu.dimension_semantics<parallel>], iteration_bounds = array<i64: 2>, scalar_prefetch = 0 : i64, scratch_operands = 0 : i64, tpu.core_type = #tpu.core_type<tc>, window_params = [{transform_indices = @transform_0, window_bounds = array<i64: 1, 4, 256>}, {transform_indices = @transform_1, window_bounds = array<i64: 1, 8, 1>}, {pipeline_mode = #tpu.pipeline_mode<synchronous>, transform_indices = @transform_2, window_bounds = array<i64: 8, 36>}, {pipeline_mode = #tpu.pipeline_mode<synchronous>, transform_indices = @transform_3, window_bounds = array<i64: 8, 1>}, {pipeline_mode = #tpu.pipeline_mode<synchronous>, transform_indices = @transform_4, window_bounds = array<i64: 8, 72>}, {pipeline_mode = #tpu.pipeline_mode<synchronous>, transform_indices = @transform_5, window_bounds = array<i64: 8, 1>}, {transform_indices = @transform_6, window_bounds = array<i64: 1, 8, 256>}]} {
    %0 = tpu.iota {dimensions = array<i32: 1>} : vector<1x256xi32>
    %c16_i32 = arith.constant 16 : i32
    %c0_i32 = arith.constant 0 : i32
    %1 = arith.cmpi eq, %c16_i32, %c0_i32 : i32
    %c1_i32 = arith.constant 1 : i32
    %2 = arith.select %1, %c1_i32, %c16_i32 : i32
    %3 = vector.broadcast %2 : i32 to vector<1x256xi32>
    %4 = arith.remsi %0, %3 : vector<1x256xi32>
    %c0_i32_0 = arith.constant 0 : i32
    %5 = vector.broadcast %c0_i32_0 : i32 to vector<1x256xi32>
    %6 = arith.cmpi ne, %4, %5 : vector<1x256xi32>
    %c0_i32_1 = arith.constant 0 : i32
    %7 = vector.broadcast %c0_i32_1 : i32 to vector<1x256xi32>
    %8 = arith.cmpi slt, %4, %7 : vector<1x256xi32>
    %c0_i32_2 = arith.constant 0 : i32
    %9 = arith.cmpi slt, %2, %c0_i32_2 : i32
    %10 = vector.broadcast %9 : i1 to vector<1x256xi1>
    %11 = vector.broadcast %10 : vector<1x256xi1> to vector<1x256xi1>
    %12 = arith.xori %8, %11 : vector<1x256xi1>
    %13 = arith.andi %12, %6 : vector<1x256xi1>
    %14 = vector.broadcast %2 : i32 to vector<1x256xi32>
    %15 = arith.addi %4, %14 : vector<1x256xi32>
    %16 = arith.select %13, %15, %4 : vector<1x256xi1>, vector<1x256xi32>
    %c0_i32_3 = arith.constant 0 : i32
    %17 = vector.broadcast %c0_i32_3 : i32 to vector<1x256xi32>
    %18 = arith.cmpi ne, %16, %17 : vector<1x256xi32>
    %c15_i32 = arith.constant 15 : i32
    %19 = vector.broadcast %c15_i32 : i32 to vector<1x256xi32>
    %20 = arith.cmpi ne, %16, %19 : vector<1x256xi32>
    %c0 = arith.constant 0 : index
    %c0_4 = arith.constant 0 : index
    %c0_5 = arith.constant 0 : index
    %21 = vector.load %arg1[%c0, %c0_4, %c0_5] : memref<1x4x256xf32, #tpu.memory_space<vmem>>, vector<1x4x256xf32>
    %22 = vector.shape_cast %21 : vector<1x4x256xf32> to vector<4x256xf32>
    %c0_6 = arith.constant 0 : index
    %c0_7 = arith.constant 0 : index
    %23 = vector.load %arg3[%c0_6, %c0_7] : memref<8x36xbf16, #tpu.memory_space<vmem>>, vector<8x36xbf16>
    %cst = arith.constant 0.000000e+00 : f32
    %24 = vector.broadcast %cst : f32 to vector<4x128xf32>
    %25 = tpu.concatenate %24, %22, %24 in 1 : vector<4x128xf32>, vector<4x256xf32>, vector<4x128xf32> -> vector<4x512xf32>
    %26 = vector.extract_strided_slice %25 {offsets = [0, 127], sizes = [4, 256], strides = [1, 1]} : vector<4x512xf32> to vector<4x256xf32>
    %cst_8 = arith.constant 0.000000e+00 : f32
    %27 = vector.shape_cast %18 : vector<1x256xi1> to vector<1x256xi1>
    %28 = vector.broadcast %27 : vector<1x256xi1> to vector<4x256xi1>
    %29 = vector.broadcast %cst_8 : f32 to vector<4x256xf32>
    %30 = arith.select %28, %26, %29 : vector<4x256xi1>, vector<4x256xf32>
    %31 = vector.extract_strided_slice %25 {offsets = [0, 129], sizes = [4, 256], strides = [1, 1]} : vector<4x512xf32> to vector<4x256xf32>
    %cst_9 = arith.constant 0.000000e+00 : f32
    %32 = vector.shape_cast %20 : vector<1x256xi1> to vector<1x256xi1>
    %33 = vector.broadcast %32 : vector<1x256xi1> to vector<4x256xi1>
    %34 = vector.broadcast %cst_9 : f32 to vector<4x256xf32>
    %35 = arith.select %33, %31, %34 : vector<4x256xi1>, vector<4x256xf32>
    %36 = tpu.concatenate %30, %22, %35 in 0 : vector<4x256xf32>, vector<4x256xf32>, vector<4x256xf32> -> vector<12x256xf32>
    %cst_10 = arith.constant 0.000000e+00 : f32
    %37 = vector.broadcast %cst_10 : f32 to vector<12x128xf32>
    %38 = tpu.concatenate %37, %36, %37 in 1 : vector<12x128xf32>, vector<12x256xf32>, vector<12x128xf32> -> vector<12x512xf32>
    %39 = vector.extract_strided_slice %38 {offsets = [0, 112], sizes = [12, 256], strides = [1, 1]} : vector<12x512xf32> to vector<12x256xf32>
    %40 = vector.extract_strided_slice %38 {offsets = [0, 144], sizes = [12, 256], strides = [1, 1]} : vector<12x512xf32> to vector<12x256xf32>
    %41 = tpu.concatenate %39, %36, %40 in 0 : vector<12x256xf32>, vector<12x256xf32>, vector<12x256xf32> -> vector<36x256xf32>
    %42 = arith.truncf %41 : vector<36x256xf32> to vector<36x256xbf16>
    %cst_11 = arith.constant dense<0.000000e+00> : vector<8x256xf32>
    %43 = tpu.matmul %23, %42, %cst_11 {dimension_numbers = #tpu.dot_dimension_numbers<[1], [0], [0], [1], [0, 0, 1, 1], [], []>} : vector<8x36xbf16>, vector<36x256xbf16>, vector<8x256xf32> -> vector<8x256xf32>
    %c0_12 = arith.constant 0 : index
    %c0_13 = arith.constant 0 : index
    %44 = vector.load %arg4[%c0_12, %c0_13] : memref<8x1xf32, #tpu.memory_space<vmem>>, vector<8x1xf32>
    %45 = vector.broadcast %44 : vector<8x1xf32> to vector<8x256xf32>
    %46 = arith.addf %43, %45 : vector<8x256xf32>
    %cst_14 = arith.constant 0.000000e+00 : f32
    %47 = vector.broadcast %cst_14 : f32 to vector<8x256xf32>
    %48 = arith.maximumf %46, %47 : vector<8x256xf32>
    %c0_15 = arith.constant 0 : index
    %c0_16 = arith.constant 0 : index
    %c0_17 = arith.constant 0 : index
    %49 = vector.load %arg2[%c0_15, %c0_16, %c0_17] : memref<1x8x1xf32, #tpu.memory_space<vmem>>, vector<1x8x1xf32>
    %50 = vector.shape_cast %49 : vector<1x8x1xf32> to vector<8x1xf32>
    %51 = vector.broadcast %50 : vector<8x1xf32> to vector<8x256xf32>
    %52 = arith.addf %48, %51 : vector<8x256xf32>
    %c0_18 = arith.constant 0 : index
    %c0_19 = arith.constant 0 : index
    %53 = vector.load %arg5[%c0_18, %c0_19] : memref<8x72xbf16, #tpu.memory_space<vmem>>, vector<8x72xbf16>
    %cst_20 = arith.constant 0.000000e+00 : f32
    %54 = vector.broadcast %cst_20 : f32 to vector<8x128xf32>
    %55 = tpu.concatenate %54, %52, %54 in 1 : vector<8x128xf32>, vector<8x256xf32>, vector<8x128xf32> -> vector<8x512xf32>
    %56 = vector.extract_strided_slice %55 {offsets = [0, 127], sizes = [8, 256], strides = [1, 1]} : vector<8x512xf32> to vector<8x256xf32>
    %cst_21 = arith.constant 0.000000e+00 : f32
    %57 = vector.shape_cast %18 : vector<1x256xi1> to vector<1x256xi1>
    %58 = vector.broadcast %57 : vector<1x256xi1> to vector<8x256xi1>
    %59 = vector.broadcast %cst_21 : f32 to vector<8x256xf32>
    %60 = arith.select %58, %56, %59 : vector<8x256xi1>, vector<8x256xf32>
    %61 = vector.extract_strided_slice %55 {offsets = [0, 129], sizes = [8, 256], strides = [1, 1]} : vector<8x512xf32> to vector<8x256xf32>
    %cst_22 = arith.constant 0.000000e+00 : f32
    %62 = vector.shape_cast %20 : vector<1x256xi1> to vector<1x256xi1>
    %63 = vector.broadcast %62 : vector<1x256xi1> to vector<8x256xi1>
    %64 = vector.broadcast %cst_22 : f32 to vector<8x256xf32>
    %65 = arith.select %63, %61, %64 : vector<8x256xi1>, vector<8x256xf32>
    %66 = tpu.concatenate %60, %52, %65 in 0 : vector<8x256xf32>, vector<8x256xf32>, vector<8x256xf32> -> vector<24x256xf32>
    %cst_23 = arith.constant 0.000000e+00 : f32
    %67 = vector.broadcast %cst_23 : f32 to vector<24x128xf32>
    %68 = tpu.concatenate %67, %66, %67 in 1 : vector<24x128xf32>, vector<24x256xf32>, vector<24x128xf32> -> vector<24x512xf32>
    %69 = vector.extract_strided_slice %68 {offsets = [0, 112], sizes = [24, 256], strides = [1, 1]} : vector<24x512xf32> to vector<24x256xf32>
    %70 = vector.extract_strided_slice %68 {offsets = [0, 144], sizes = [24, 256], strides = [1, 1]} : vector<24x512xf32> to vector<24x256xf32>
    %71 = tpu.concatenate %69, %66, %70 in 0 : vector<24x256xf32>, vector<24x256xf32>, vector<24x256xf32> -> vector<72x256xf32>
    %72 = arith.truncf %71 : vector<72x256xf32> to vector<72x256xbf16>
    %cst_24 = arith.constant dense<0.000000e+00> : vector<8x256xf32>
    %73 = tpu.matmul %53, %72, %cst_24 {dimension_numbers = #tpu.dot_dimension_numbers<[1], [0], [0], [1], [0, 0, 1, 1], [], []>} : vector<8x72xbf16>, vector<72x256xbf16>, vector<8x256xf32> -> vector<8x256xf32>
    %c0_25 = arith.constant 0 : index
    %c0_26 = arith.constant 0 : index
    %74 = vector.load %arg6[%c0_25, %c0_26] : memref<8x1xf32, #tpu.memory_space<vmem>>, vector<8x1xf32>
    %75 = vector.broadcast %74 : vector<8x1xf32> to vector<8x256xf32>
    %76 = arith.addf %73, %75 : vector<8x256xf32>
    %cst_27 = arith.constant 0.000000e+00 : f32
    %77 = vector.broadcast %cst_27 : f32 to vector<8x256xf32>
    %78 = arith.maximumf %76, %77 : vector<8x256xf32>
    %c0_28 = arith.constant 0 : index
    %c0_29 = arith.constant 0 : index
    %c0_30 = arith.constant 0 : index
    %79 = vector.load %arg7[%c0_28, %c0_29, %c0_30] : memref<1x8x256xf32, #tpu.memory_space<vmem>>, vector<1x8x256xf32>
    %80 = vector.shape_cast %79 : vector<1x8x256xf32> to vector<8x256xf32>
    %81 = vector.shape_cast %78 : vector<8x256xf32> to vector<1x8x256xf32>
    tpu.vector_store %arg7[%c0_28, %c0_29, %c0_30], %81 {strides = array<i32>} : memref<1x8x256xf32, #tpu.memory_space<vmem>>, vector<1x8x256xf32>,
    return
  }
  func.func @transform_0(%arg0: i32) -> (i32, i32, i32) {
    %c0_i32 = arith.constant 0 : i32
    %c0_i32_0 = arith.constant 0 : i32
    %c0_i32_1 = arith.constant 0 : i32
    return %arg0, %c0_i32, %c0_i32_0 : i32, i32, i32
  }
  func.func @transform_1(%arg0: i32) -> (i32, i32, i32) {
    %c0_i32 = arith.constant 0 : i32
    %c0_i32_0 = arith.constant 0 : i32
    %c0_i32_1 = arith.constant 0 : i32
    return %arg0, %c0_i32, %c0_i32_0 : i32, i32, i32
  }
  func.func @transform_2(%arg0: i32) -> (i32, i32) {
    %c0_i32 = arith.constant 0 : i32
    %c0_i32_0 = arith.constant 0 : i32
    %c0_i32_1 = arith.constant 0 : i32
    return %c0_i32, %c0_i32_0 : i32, i32
  }
  func.func @transform_3(%arg0: i32) -> (i32, i32) {
    %c0_i32 = arith.constant 0 : i32
    %c0_i32_0 = arith.constant 0 : i32
    %c0_i32_1 = arith.constant 0 : i32
    return %c0_i32, %c0_i32_0 : i32, i32
  }
  func.func @transform_4(%arg0: i32) -> (i32, i32) {
    %c0_i32 = arith.constant 0 : i32
    %c0_i32_0 = arith.constant 0 : i32
    %c0_i32_1 = arith.constant 0 : i32
    return %c0_i32, %c0_i32_0 : i32, i32
  }
  func.func @transform_5(%arg0: i32) -> (i32, i32) {
    %c0_i32 = arith.constant 0 : i32
    %c0_i32_0 = arith.constant 0 : i32
    %c0_i32_1 = arith.constant 0 : i32
    return %c0_i32, %c0_i32_0 : i32, i32
  }
  func.func @transform_6(%arg0: i32) -> (i32, i32, i32) {
    %c0_i32 = arith.constant 0 : i32
    %c0_i32_0 = arith.constant 0 : i32
    %c0_i32_1 = arith.constant 0 : i32
    return %arg0, %c0_i32, %c0_i32_0 : i32, i32, i32
  }
}

</mosaic_0001>

<bundles_post_ra>
// kernel: downblock_pallas.1
= control target key start
LH: loop header
LB: loop body
LE: loop exit
PB: predicated region body
PF: predicated region fallthrough
CT: control target
= control target key end

     0   :  { %s954_s21 = smov 0   ;;  %s1139_s0 = inlined_call_operand.vmem [shape: f32[2,4,256], index: 0, kind: input, shape index: {}]   ;;  %s1140_s1 = inlined_call_operand.vmem [shape: f32[2,8,1], index: 1, kind: input, shape index: {}]   ;;  %s1141_s2 = inlined_call_operand.vmem [shape: bf16[8,36], index: 2, kind: input, shape index: {}]   ;;  %s1142_s3 = inlined_call_operand.vmem [shape: f32[8,1], index: 3, kind: input, shape index: {}]   ;;  %s1143_s4 = inlined_call_operand.vmem [shape: bf16[8,72], index: 4, kind: input, shape index: {}]   ;;  %s1144_s5 = inlined_call_operand.vmem [shape: f32[8,1], index: 5, kind: input, shape index: {}]   ;;  %s1145_s6 = inlined_call_operand.vmem [shape: f32[2,8,256], index: 6, kind: output, shape index: {}]  }
   0x1 LB: > { %s795_s22 = sadd.s32 4294967295, %s909_s21   ;;  %p799_p0 = scmp.ge.s32.totalorder %s909_s21, 1  ;;  %s909_s21 = sphi %s954_s21, %s16_s21  }
   0x2   : > { %p221_p1 = scmp.lt.s32.totalorder %s909_s21, 3 }
   0x4   : > { %p222_p2 = pnand %p799_p0, %p221_p1 }
   0x5   : > { %p255_p3 = scmp.lt.s32.totalorder (!%p222_p2), %s795_s22, 1  ;;  %v911_v1 = vmov (!%p222_p2), 0.0   ;;  %s912_s27 = smov (!%p222_p2), 1   ;;  %v270_v5 = vlaneseq (!%p222_p2)  ;;  %vm316_vm0 = vcmask (!%p222_p2), 7168   ;;  %vm342_vm2 = vcmask (!%p222_p2), 1043456  }
   0x6   : > { %225 = sbr.rel (%p222_p2) target bundleno = 1220 (0x4c4), region = 44  ;;  %s913_s28 = smov (!%p222_p2), 127   ;;  %vm333_vm4 = vcmask (!%p222_p2), 1039360   ;;  %vm363_vm7 = vcmask (!%p222_p2), 916480   ;;  %vm382_vm8 = vcmask (!%p222_p2), 785408   ;;  %vm438_vm9 = vcmask (!%p222_p2), 130048  }
   0x7   : > { %v271_v6 = vand.u32 (!%p222_p2), 127, %v270_v5  ;;  %s914_s29 = smov (!%p222_p2), 112   ;;  %s915_s30 = smov (!%p222_p2), 96   ;;  %vm453_vm10 = vcmask (!%p222_p2), 1041408   ;;  %vm449_vm11 = vcmask (!%p222_p2), 293888   ;;  %v918_v13 = vmov (!%p222_p2), 0.0|0.0  }
   0x8   : > { %s916_s7 = smov (!%p222_p2), 16   ;;  %vm673_vm12 = vcmask (!%p222_p2), 588800  }
   0x9   : > { %v272_v7 = vadd.s32 (!%p222_p2), 128, %v271_v6  ;;  %v277_v8 = vand.u32 (!%p222_p2), 15, %v271_v6 }
   0xb   : > { %v284_v9 = vand.u32 (!%p222_p2), 15, %v272_v7  ;;  %vm980_vm1 = vcmp.ne.s32.totalorder (!%p222_p2), %v277_v8, 0  ;;  %vm984_vm3 = vcmp.ne.s32.totalorder (!%p222_p2), %v277_v8, 15 }
   0xd   : > { %s1155_s22 = smov (!%p255_p3, %s795_s22), 1  ;;  %vm988_vm5 = vcmp.ne.s32.totalorder %v284_v9, 0  ;;  %vm998_vm6 = vcmp.ne.s32.totalorder %v284_v9, 15 }
   0xe   : > { %s811_s23 = sshll.u32 %s1155_s22, 3  ;;  %s812_s19 = sshll.u32 %s1155_s22, 4 }
   0xf   : > { %s259_s26 = scalar_lea.vmem %s1139_s0, %s811_s23  ;;  %s263_s10 = scalar_lea.vmem %s1140_s1, %s811_s23 }
  0x10   : > { %v301_v0 = vld [vmem:[%s259_s26] sm:$0xff]  ;;  %s268_s24 = scalar_lea.vmem %s1145_s6, %s812_s19 }
  0x11   : > { %v829_v2 = vpack.i.bf16 %v301_v0, %v911_v1  ;;  %v304_v3 = vcombine.high %v301_v0, %v301_v0  ;;  %v340_v14 = vcombine.low %v301_v0, %v301_v0 }
  0x13   : > { %830 = vrot.lane.b32.xlu0 %v829_v2, %s912_s27  ;;  %v834_v4 = vpack.i.bf16 %v304_v3, %v301_v0 }
  0x15   : > { %835 = vrot.lane.b32.xlu1 %v834_v4, %s913_s28  ;;  %v917_v4 = vmov 0  }
  0x16   : > { %492 = vmatprep.mubr.bf16.mxu0 %v917_v4  ;;  %859 = vset.pattern.permute.xlu0 %v917_v4 }
  0x17   : > { %314 = vrot.lane.b32.xlu0 %v304_v3, %s912_s27  ;;  %860 = vset.pattern.permute.xlu1 %v917_v4 }
  0x18   : > { %715 = vmatprep.mubr.bf16.mxu1 %v917_v4 }
  0x19   : > { %331 = vrot.lane.b32.xlu1 %v911_v1, %s913_s28 }
  0x85   : > { %v976_v10 = vpop.permute.xlu0 %830 }
  0x86   : > { %v833_v11 = vunpack.i.h.bf16 %v976_v10  ;;  %v832_v12 = vunpack.i.l.bf16 %v976_v10 }
  0x87   : > { %v836_v15 = vpop.permute.xlu1 %835 }
  0x88   : > { %v838_v17 = vunpack.i.h.bf16 %v836_v15  ;;  %v837_v18 = vunpack.i.l.bf16 %v836_v15  ;;  %v317_v20 = vsel %vm316_vm0, %v832_v12, %v833_v11  ;;  %v405_v15 = vld [vmem:[%s1142_s3] sm:$0xff] }
  0x89   : > { %v315_v21 = vpop.permute.xlu0 %314  ;;  %v321_v22 = vsel %vm980_vm1, %v317_v20, 0.0 }
  0x8a   : > { %v318_v23 = vsel %vm316_vm0, %v833_v11, %v315_v21  ;;  %v334_v25 = vsel %vm333_vm4, %v837_v18, %v838_v17  ;;  %v343_v26 = vsel %vm342_vm2, %v321_v22, %v340_v14 }
  0x8b   : > { %v322_v27 = vsel %vm988_vm5, %v318_v23, 0.0  ;;  %v1006_v28 = vpop.permute.xlu1 %331  ;;  %v338_v29 = vsel %vm984_vm3, %v334_v25, 0.0  ;;  %v349_v32 = vrot.slane %v343_v26, 4 }
  0x8c   : > { %v344_v30 = vsel %vm342_vm2, %v322_v27, %v301_v0  ;;  %v335_v31 = vsel %vm333_vm4, %v838_v17, %v1006_v28  ;;  %v351_v33 = vrot.slane %v338_v29, 4  ;;  %v503_v17 = vld [vmem:[%s263_s10] sm:$0xff] }
  0x8d   : > { %v339_v34 = vsel %vm998_vm6, %v335_v31, 0.0  ;;  %v350_v35 = vrot.slane %v344_v30, 4  ;;  %v844_v41 = vpack.i.bf16 %v344_v30, %v343_v26 }
  0x8e   : > { %v353_v36 = vrot.slane %v339_v34, 4  ;;  %v352_v38 = vsel %vm342_vm2, %v349_v32, %v351_v33  ;;  %v854_v42 = vpack.i.bf16 %v339_v34, %v338_v29 }
  0x8f   : > { %v839_v37 = vpack.i.bf16 %v350_v35, %v349_v32 }
  0x90   : > { %v354_v39 = vsel %vm342_vm2, %v350_v35, %v353_v36 }
  0x91   : > { %840 = vrot.lane.b32.xlu0 %v839_v37, %s914_s29  ;;  %v849_v40 = vpack.i.bf16 %v354_v39, %v352_v38  ;;  %v302_v37 = vld [vmem:[%s1141_s2] sm:$0xf] }
  0x93   : > { %850 = vrot.lane.b32.xlu1 %v849_v40, %s914_s29 }
  0x95   : > { %845 = vrot.lane.b32.xlu0 %v844_v41, %s915_s30 }
  0x97   : > { %376 = vrot.lane.b32.xlu1 %v911_v1, %s915_s30 }
  0x99   : > { %855 = vrot.lane.b32.xlu0 %v854_v42, %s915_s30 }
 0x103   : > { %v841_v43 = vpop.permute.xlu0 %840 }
 0x104   : > { %v842_v44 = vunpack.i.l.bf16 %v841_v43  ;;  %v843_v45 = vunpack.i.h.bf16 %v841_v43 }
 0x105   : > { %v851_v46 = vpop.permute.xlu1 %850 }
 0x106   : > { %v393_v47 = vsel %vm342_vm2, 0.0, %v842_v44  ;;  %v852_v50 = vunpack.i.l.bf16 %v851_v46  ;;  %v364_v53 = vsel %vm363_vm7, %v842_v44, %v843_v45  ;;  %v853_v54 = vunpack.i.h.bf16 %v851_v46 }
 0x107   : > { %v846_v48 = vpop.permute.xlu0 %845  ;;  %v396_v49 = vpack.c.bf16 %v393_v47, %v911_v1  ;;  %v395_v59 = vsel %vm342_vm2, %v339_v34, %v843_v45  ;;  %v394_v61 = vsel %vm342_vm2, %v338_v29, %v364_v53 }
 0x108   : > { %v848_v51 = vunpack.i.h.bf16 %v846_v48  ;;  %v847_v52 = vunpack.i.l.bf16 %v846_v48  ;;  %v398_v62 = vpack.c.bf16 %v395_v59, %v344_v30  ;;  %v397_v2 = vpack.c.bf16 %v394_v61, %v343_v26 }
 0x109   : > { %420 = vrot.lane.b32.xlu1 %v396_v49, %s916_s7  ;;  %v1027_v55 = vpop.permute.xlu1 %376  ;;  %v365_v5 = vsel %vm363_vm7, %v852_v50, %v853_v54 }
 0x10a   : > { %v399_v56 = vpack.c.bf16 %v847_v52, %v852_v50  ;;  %v384_v57 = vsel %vm382_vm8, %v848_v51, %v1027_v55  ;;  %v383_v3 = vsel %vm382_vm8, %v847_v52, %v848_v51 }
 0x10b   : > { %v401_v58 = vpack.c.bf16 %v384_v57, %v853_v54  ;;  %v856_v60 = vpop.permute.xlu0 %855  ;;  %v400_v6 = vpack.c.bf16 %v383_v3, %v365_v5 }
 0x10c   : > { %426 = vrot.lane.b32.xlu0 %v399_v56, %s916_s7  ;;  %v858_v63 = vunpack.i.h.bf16 %v856_v60  ;;  %v857_v0 = vunpack.i.l.bf16 %v856_v60 }
 0x10d   : > { %430 = vrot.lane.b32.xlu1 %v401_v58, %s916_s7 }
 0x10e   : > { %v402_v7 = vpack.c.bf16 %v857_v0, %v857_v0  ;;  %v385_v8 = vsel %vm382_vm8, %v857_v0, %v858_v63  ;;  %v386_v9 = vsel %vm382_vm8, %v858_v63, %v1027_v55 }
 0x10f   : > { %v403_v11 = vpack.c.bf16 %v385_v8, %v385_v8  ;;  %v404_v14 = vpack.c.bf16 %v386_v9, %v386_v9 }
 0x110   : > { %424 = vrot.lane.b32.xlu0 %v398_v62, %s916_s7 }
 0x111   : > { %422 = vrot.lane.b32.xlu1 %v397_v2, %s916_s7 }
 0x114   : > { %428 = vrot.lane.b32.xlu0 %v400_v6, %s916_s7 }
 0x115   : > { %432 = vrot.lane.b32.xlu1 %v402_v7, %s916_s7 }
 0x118   : > { %434 = vrot.lane.b32.xlu0 %v403_v11, %s916_s7 }
 0x119   : > { %436 = vrot.lane.b32.xlu1 %v404_v14, %s916_s7 }
 0x11c   : > { %408 = vperm.xlu0 %859, %v405_v15  }
 0x11d   : > { %506 = vperm.xlu1 %860, %v503_v17  }
 0x17b   : > { %v421_v18 = vpop.permute.xlu1 %420 }
 0x17e   : > { %v427_v20 = vpop.permute.xlu0 %426 }
 0x17f   : > { %v431_v21 = vpop.permute.xlu1 %430 }
 0x182   : > { %v425_v22 = vpop.permute.xlu0 %424 }
 0x183   : > { %v423_v23 = vpop.permute.xlu1 %422 }
 0x184   : > { %v440_v25 = vsel %vm438_vm9, %v423_v23, %v425_v22  ;;  %v439_v26 = vsel %vm438_vm9, %v421_v18, %v423_v23 }
 0x185   : > { %460 = vmatprep.subr.bf16.mxu0 %v440_v25 }
 0x186   : > { %461 = vmatpush1.bf16.msra.mxu0 %v439_v26  ;;  %v429_v27 = vpop.permute.xlu0 %428 }
 0x187   : > { %v433_v29 = vpop.permute.xlu1 %432  ;;  %v442_v30 = vsel %vm438_vm9, %v429_v27, %v431_v21  ;;  %v441_v31 = vsel %vm438_vm9, %v427_v20, %v429_v27 }
 0x188   : > { %462 = vmatprep.subr.bf16.mxu0 %v442_v30 }
 0x18a   : > { %463 = vmatpush1.bf16.msra.mxu0 %v441_v31  ;;  %v435_v32 = vpop.permute.xlu0 %434 }
 0x18b   : > { %v443_v33 = vsel %vm438_vm9, %v433_v29, %v435_v32  ;;  %v437_v34 = vpop.permute.xlu1 %436 }
 0x18c   : > { %v444_v35 = vsel %vm438_vm9, %v435_v32, %v437_v34  ;;  %v455_v36 = vsel %vm453_vm10, %v443_v33, 0 }
 0x18d   : > { %805 = vmatprep.subr.msk.bf16.mxu0 %vm453_vm10, %v444_v35 }
 0x18e   : > { %465 = vmatpush1.bf16.msra.mxu0 %v455_v36 }
 0x191   : > { %806 = vmatmul.mubr.msk.bf16.vlgmr.msra.gmra.mrb[0].mxu0 %vm449_vm11, %v302_v37 }
 0x19b   : > { %v409_v38 = vpop.permute.xlu0 %408 }
 0x19c   : > { %v507_v44 = vpop.permute.xlu1 %506 }
 0x264   : > { %v494_v39 = vpop.f32.mrb[0].mxu0 }
 0x265   : > { %v495_v40 = vadd.f32 %v494_v39, %v409_v38  ;;  %v496_v41 = vpop.f32.mrb[1].mxu0 }
 0x266   : > { %v497_v42 = vadd.f32 %v496_v41, %v409_v38  ;;  %v498_v43 = vpop.f32.mrb[2].mxu0 }
 0x267   : > { %v501_v45 = vmax.f32 %v495_v40, 0.0  ;;  %v499_v46 = vpop.f32.mrb[3].mxu0 }
 0x268   : > { %v502_v47 = vmax.f32 %v497_v42, 0.0 }
 0x269   : > { %v509_v48 = vadd.f32 %v507_v44, %v501_v45 }
 0x26a   : > { %v510_v49 = vadd.f32 %v507_v44, %v502_v47 }
 0x26c   : > { %v866_v50 = vpack.i.bf16 %v510_v49, %v509_v48 }
 0x26e   : > { %867 = vrot.lane.b32.xlu0 %v866_v50, %s913_s28  ;;  %862 = vrot.lane.b32.xlu1 %v866_v50, %s912_s27 }
 0x272   : > { %872 = vrot.lane.b32.xlu0 %v866_v50, %s914_s29 }
 0x2e0   : > { %v868_v51 = vpop.permute.xlu0 %867  ;;  %v863_v52 = vpop.permute.xlu1 %862 }
 0x2e1   : > { %v870_v53 = vunpack.i.h.bf16 %v868_v51  ;;  %v869_v54 = vunpack.i.l.bf16 %v868_v51  ;;  %v865_v56 = vunpack.i.h.bf16 %v863_v52  ;;  %v864_v57 = vunpack.i.l.bf16 %v863_v52  ;;  %v604_v51 = vld [vmem:[%s1144_s5] sm:$0xff] }
 0x2e3   : > { %v529_v58 = vsel %vm333_vm4, %v870_v53, %v1006_v28  ;;  %v528_v59 = vsel %vm333_vm4, %v869_v54, %v870_v53  ;;  %v518_v60 = vsel %vm316_vm0, %v832_v12, %v864_v57  ;;  %v519_v61 = vsel %vm316_vm0, %v864_v57, %v865_v56 }
 0x2e4   : > { %v522_v62 = vsel %vm980_vm1, %v518_v60, 0.0  ;;  %v523_v63 = vsel %vm988_vm5, %v519_v61, 0.0  ;;  %v532_v2 = vsel %vm984_vm3, %v528_v59, 0.0  ;;  %v533_v28 = vsel %vm998_vm6, %v529_v58, 0.0  ;;  %v873_v19 = vpop.permute.xlu0 %872 }
 0x2e5   : > { %v891_v0 = vpack.i.bf16 %v523_v63, %v522_v62  ;;  %v896_v10 = vpack.i.bf16 %v533_v28, %v532_v2  ;;  %v591_v12 = vpack.c.bf16 %v510_v49, %v523_v63  ;;  %v590_v16 = vpack.c.bf16 %v509_v48, %v522_v62 }
 0x2e6   : > { %v875_v11 = vunpack.i.h.bf16 %v873_v19  ;;  %v874_v14 = vunpack.i.l.bf16 %v873_v19 }
 0x2e7   : > { %892 = vrot.lane.b32.xlu0 %v891_v0, %s915_s30  ;;  %877 = vrot.lane.b32.xlu1 %v891_v0, %s914_s29 }
 0x2e8   : > { %v551_v33 = vsel %vm363_vm7, %v874_v14, %v875_v11 }
 0x2eb   : > { %897 = vrot.lane.b32.xlu0 %v896_v10, %s915_s30  ;;  %882 = vrot.lane.b32.xlu1 %v896_v10, %s914_s29 }
 0x2ef   : > { %629 = vrot.lane.b32.xlu0 %v591_v12, %s916_s7  ;;  %887 = vrot.lane.b32.xlu1 %v866_v50, %s915_s30 }
 0x2f3   : > { %625 = vrot.lane.b32.xlu1 %v918_v13, %s916_s7 }
 0x2f7   : > { %627 = vrot.lane.b32.xlu1 %v590_v16, %s916_s7 }
 0x359   : > { %v893_v24 = vpop.permute.xlu0 %892  ;;  %v878_v3 = vpop.permute.xlu1 %877 }
 0x35a   : > { %v880_v4 = vunpack.i.h.bf16 %v878_v3  ;;  %v879_v5 = vunpack.i.l.bf16 %v878_v3  ;;  %v894_v31 = vunpack.i.l.bf16 %v893_v24  ;;  %v895_v32 = vunpack.i.h.bf16 %v893_v24  ;;  %v511_v3 = vld [vmem:[%s1143_s4] sm:$0xf] }
 0x35c   : > { %v594_v6 = vpack.c.bf16 %v880_v4, %v533_v28  ;;  %v592_v7 = vpack.c.bf16 %v879_v5, %v911_v1  ;;  %v550_v23 = vsel %vm363_vm7, %v879_v5, %v880_v4  ;;  %v574_v43 = vsel %vm382_vm8, %v894_v31, %v895_v32 }
 0x35d   : > { %v898_v8 = vpop.permute.xlu0 %897  ;;  %v883_v9 = vpop.permute.xlu1 %882  ;;  %v593_v26 = vpack.c.bf16 %v550_v23, %v532_v2  ;;  %v575_v44 = vsel %vm382_vm8, %v895_v32, %v1027_v55 }
 0x35e   : > { %v885_v15 = vunpack.i.h.bf16 %v883_v9  ;;  %v884_v17 = vunpack.i.l.bf16 %v883_v9  ;;  %631 = vrot.lane.b32.xlu0 %v592_v7, %s916_s7  ;;  %635 = vrot.lane.b32.xlu1 %v594_v6, %s916_s7  ;;  %v899_v18 = vunpack.i.l.bf16 %v898_v8  ;;  %v900_v36 = vunpack.i.h.bf16 %v898_v8 }
 0x360   : > { %v597_v20 = vpack.c.bf16 %v885_v15, %v875_v11  ;;  %v595_v21 = vpack.c.bf16 %v884_v17, %v874_v14  ;;  %v601_v1 = vpack.c.bf16 %v899_v18, %v899_v18  ;;  %v552_v30 = vsel %vm363_vm7, %v884_v17, %v885_v15 }
 0x361   : > { %v888_v22 = vpop.permute.xlu1 %887  ;;  %v596_v35 = vpack.c.bf16 %v552_v30, %v551_v33  ;;  %v630_v37 = vpop.permute.xlu0 %629  ;;  %v578_v47 = vsel %vm382_vm8, %v899_v18, %v900_v36  ;;  %v579_v48 = vsel %vm382_vm8, %v900_v36, %v1027_v55 }
 0x362   : > { %641 = vrot.lane.b32.xlu0 %v597_v20, %s916_s7  ;;  %637 = vrot.lane.b32.xlu1 %v595_v21, %s916_s7  ;;  %v889_v25 = vunpack.i.l.bf16 %v888_v22  ;;  %v890_v27 = vunpack.i.h.bf16 %v888_v22  ;;  %v602_v49 = vpack.c.bf16 %v578_v47, %v578_v47  ;;  %v603_v50 = vpack.c.bf16 %v579_v48, %v579_v48 }
 0x364   : > { %v598_v34 = vpack.c.bf16 %v889_v25, %v894_v31  ;;  %v576_v39 = vsel %vm382_vm8, %v889_v25, %v890_v27  ;;  %v577_v40 = vsel %vm382_vm8, %v890_v27, %v1027_v55 }
 0x365   : > { %v626_v29 = vpop.permute.xlu1 %625  ;;  %v599_v45 = vpack.c.bf16 %v576_v39, %v574_v43  ;;  %v600_v46 = vpack.c.bf16 %v577_v40, %v575_v44 }
 0x366   : > { %633 = vrot.lane.b32.xlu0 %v593_v26, %s916_s7  ;;  %649 = vrot.lane.b32.xlu1 %v601_v1, %s916_s7 }
 0x369   : > { %v628_v38 = vpop.permute.xlu1 %627 }
 0x36a   : > { %643 = vrot.lane.b32.xlu0 %v598_v34, %s916_s7  ;;  %639 = vrot.lane.b32.xlu1 %v596_v35, %s916_s7  ;;  %v656_v41 = vsel %vm438_vm9, %v628_v38, %v630_v37  ;;  %v655_v42 = vsel %vm438_vm9, %v626_v29, %v628_v38 }
 0x36b   : > { %683 = vmatprep.subr.bf16.mxu1 %v656_v41 }
 0x36c   : > { %684 = vmatpush1.bf16.msra.mxu1 %v655_v42 }
 0x36e   : > { %645 = vrot.lane.b32.xlu0 %v599_v45, %s916_s7  ;;  %647 = vrot.lane.b32.xlu1 %v600_v46, %s916_s7 }
 0x372   : > { %651 = vrot.lane.b32.xlu0 %v602_v49, %s916_s7  ;;  %653 = vrot.lane.b32.xlu1 %v603_v50, %s916_s7 }
 0x376   : > { %607 = vperm.xlu0 %859, %v604_v51  }
 0x3d0   : > { %v632_v52 = vpop.permute.xlu0 %631  ;;  %v636_v53 = vpop.permute.xlu1 %635 }
 0x3d4   : > { %v642_v54 = vpop.permute.xlu0 %641  ;;  %v638_v56 = vpop.permute.xlu1 %637 }
 0x3d8   : > { %v634_v55 = vpop.permute.xlu0 %633  ;;  %v650_v57 = vpop.permute.xlu1 %649 }
 0x3d9   : > { %v658_v58 = vsel %vm438_vm9, %v634_v55, %v636_v53  ;;  %v657_v59 = vsel %vm438_vm9, %v632_v52, %v634_v55 }
 0x3da   : > { %685 = vmatprep.subr.bf16.mxu1 %v658_v58 }
 0x3db   : > { %686 = vmatpush1.bf16.msra.mxu1 %v657_v59 }
 0x3dc   : > { %v644_v60 = vpop.permute.xlu0 %643  ;;  %v640_v61 = vpop.permute.xlu1 %639 }
 0x3dd   : > { %v660_v62 = vsel %vm438_vm9, %v640_v61, %v642_v54  ;;  %v659_v63 = vsel %vm438_vm9, %v638_v56, %v640_v61 }
 0x3de   : > { %687 = vmatprep.subr.bf16.mxu1 %v660_v62 }
 0x3df   : > { %688 = vmatpush1.bf16.msra.mxu1 %v659_v63 }
 0x3e0   : > { %v646_v0 = vpop.permute.xlu0 %645  ;;  %v648_v2 = vpop.permute.xlu1 %647 }
 0x3e1   : > { %v662_v28 = vsel %vm438_vm9, %v646_v0, %v648_v2  ;;  %v661_v10 = vsel %vm438_vm9, %v644_v60, %v646_v0 }
 0x3e2   : > { %689 = vmatprep.subr.bf16.mxu1 %v662_v28 }
 0x3e3   : > { %690 = vmatpush1.bf16.msra.mxu1 %v661_v10 }
 0x3e4   : > { %v652_v12 = vpop.permute.xlu0 %651  ;;  %v654_v13 = vpop.permute.xlu1 %653 }
 0x3e5   : > { %v663_v16 = vsel %vm438_vm9, %v650_v57, %v652_v12  ;;  %v664_v19 = vsel %vm438_vm9, %v652_v12, %v654_v13 }
 0x3e6   : > { %807 = vmatprep.subr.msk.bf16.mxu1 %vm342_vm2, %v664_v19  ;;  %v678_v24 = vsel %vm342_vm2, %v663_v16, 0 }
 0x3e7   : > { %692 = vmatpush1.bf16.msra.mxu1 %v678_v24 }
 0x3ea   : > { %808 = vmatmul.mubr.msk.bf16.vlgmr.msra.gmra.mrb[0].mxu1 %vm673_vm12, %v511_v3 }
 0x3f5   : > { %v608_v4 = vpop.permute.xlu0 %607 }
 0x4bd   : > { %v717_v5 = vpop.f32.mrb[0].mxu1 }
 0x4be   : > { %v718_v6 = vadd.f32 %v717_v5, %v608_v4  ;;  %v719_v7 = vpop.f32.mrb[1].mxu1 }
 0x4bf   : > { %v720_v8 = vadd.f32 %v719_v7, %v608_v4  ;;  %v721_v9 = vpop.f32.mrb[2].mxu1 }
 0x4c0   : > { %v724_v11 = vmax.f32 %v718_v6, 0.0  ;;  %v722_v14 = vpop.f32.mrb[3].mxu1 }
 0x4c1   : > { %v725_v15 = vmax.f32 %v720_v8, 0.0 }
 0x4c2   : > { %726 = vst [vmem:[%s268_s24] sm:$0xff] %v724_v11 }
 0x4c3   : > { %727 = vst [vmem:[%s268_s24 + $0x8] sm:$0xff] %v725_v15 }
 0x4c4 PF: > { %s16_s21 = sadd.s32 1, %s909_s21  }
 0x4c5   : > { %p13_p4 = scmp.ge.s32.totalorder %s16_s21, 4  }
 0x4c7   :  { %15 = sbr.rel (!%p13_p4) target bundleno = 1 (0x1), region = 77 }

</bundles_post_ra>
